<compile_context>
chip_gen: v7x
topology: tpu7x:2x2x1
jax: 0.10.0
libtpu: 0.0.40
codegen_flags: <defaults>
</compile_context>

<pallas_src>
import functools

import jax
import jax.numpy as jnp
from jax.experimental import pallas as pl
from jax.experimental.pallas import tpu as pltpu


# ----------------------------------------------------------------------------
# Pallas kernel: whole ActorCritic forward for one batch tile.
# ----------------------------------------------------------------------------
def _actor_critic_kernel(
    s_ref,                          # [TB, num_inputs]
    w1_ref, b1_ref,                 # fused layer-1: [num_inputs, 2*Hp], [1, 2*Hp]
    w2a_ref, b2a_ref,               # actor layer-2 (lane-padded): [Hp, Hp], [1, Hp]
    w2c_ref, b2c_ref,               # critic layer-2 (lane-padded): [Hp, Hp], [1, Hp]
    ha_ref,                         # actor mean head rows:  [R, Hp]
    hc_ref,                         # critic value head row: [R, Hp]
    bh_ref,                         # fused head bias column: [R, 1]
    out_ref,                        # [R, TB]  transposed, lane-dense output
    *, hidden_pad,
):
    s = s_ref[...]

    # ---- fused layer 1 (actor + critic share the input) ---------------------
    # Actor occupies lane group [0, Hp), critic [Hp, 2Hp): the slices below are
    # 128-lane aligned, so no cross-lane relayout is needed.
    h1 = jnp.tanh(
        jnp.dot(s, w1_ref[...], preferred_element_type=jnp.float32) + b1_ref[...]
    )
    xa = h1[:, :hidden_pad]
    xc = h1[:, hidden_pad:]

    # ---- layer 2 per branch --------------------------------------------------
    xa = jnp.tanh(
        jnp.dot(xa, w2a_ref[...], preferred_element_type=jnp.float32) + b2a_ref[...]
    )
    xc = jnp.tanh(
        jnp.dot(xc, w2c_ref[...], preferred_element_type=jnp.float32) + b2c_ref[...]
    )

    # ---- fused heads, transposed output --------------------------------------
    # out[r, b]: rows 0:A = actor mean, row A = critic value, rest zero.
    # The zero-padded head rows/cols select the right contributions, so the
    # slab is exactly matmul(+matmul)+bias -> a single unmasked lane-dense store.
    out = jnp.dot(ha_ref[...], xa.T, preferred_element_type=jnp.float32)
    out = out + jnp.dot(hc_ref[...], xc.T, preferred_element_type=jnp.float32)
    out_ref[...] = out + bh_ref[...]


# ----------------------------------------------------------------------------
# Parameter packing (do this ONCE per parameter update, not per forward step).
# ----------------------------------------------------------------------------
def pack_params(p):
    num_inputs = p["w1a"].shape[0]
    hidden = p["w2a"].shape[0]
    num_actions = p["wm"].shape[1]
    hidden_pad = pl.cdiv(hidden, 128) * 128          # lane-group aligned per branch
    out_rows = pl.cdiv(num_actions + 1, 8) * 8       # mean rows + value row, sublane aligned

    f32 = jnp.float32
    # fused layer 1: actor -> cols [0:H), critic -> cols [Hp:Hp+H)
    w1f = jnp.zeros((num_inputs, 2 * hidden_pad), f32)
    w1f = w1f.at[:, :hidden].set(p["w1a"]).at[:, hidden_pad:hidden_pad + hidden].set(p["w1c"])
    b1f = jnp.zeros((1, 2 * hidden_pad), f32)
    b1f = b1f.at[:, :hidden].set(p["b1a"]).at[:, hidden_pad:hidden_pad + hidden].set(p["b1c"])

    # layer 2, each branch padded to its own [Hp, Hp] block (zero pad is inert:
    # tanh(0)=0 and the head rows beyond H are zero).
    w2a = jnp.zeros((hidden_pad, hidden_pad), f32).at[:hidden, :hidden].set(p["w2a"])
    b2a = jnp.zeros((1, hidden_pad), f32).at[:, :hidden].set(p["b2a"])
    w2c = jnp.zeros((hidden_pad, hidden_pad), f32).at[:hidden, :hidden].set(p["w2c"])
    b2c = jnp.zeros((1, hidden_pad), f32).at[:, :hidden].set(p["b2c"])

    # heads as output-row matrices: out_t[r, b] = sum_h head[r, h] * x2[b, h] + bh[r]
    head_a = jnp.zeros((out_rows, hidden_pad), f32).at[:num_actions, :hidden].set(p["wm"].T)
    head_c = jnp.zeros((out_rows, hidden_pad), f32).at[num_actions, :hidden].set(p["w3c"][:, 0])
    b_head = jnp.zeros((out_rows, 1), f32)
    b_head = b_head.at[:num_actions, 0].set(p["bm"][0]).at[num_actions, 0].set(p["b3c"][0, 0])

    return {
        "tensors": (w1f, b1f, w2a, b2a, w2c, b2c, head_a, head_c, b_head),
        "log_std": p["log_std"],
        "dims": dict(num_inputs=num_inputs, hidden=hidden, hidden_pad=hidden_pad,
                     num_actions=num_actions, out_rows=out_rows),
    }


# ----------------------------------------------------------------------------
# Batch tiling: balanced tiles, lane-dense (multiple of 128), >=2 even steps
# for B>128 so both v7x TensorCores get work.
# ----------------------------------------------------------------------------
def _tile_batch(batch, target_tile=1024):
    n_tiles = max(1, pl.cdiv(batch, target_tile))
    if batch > 128:
        n_tiles = max(n_tiles, 2)          # v7x: give both TCs a grid step
    if n_tiles > 1 and n_tiles % 2 == 1:
        n_tiles += 1                       # even split across 2 TCs
    block_b = pl.cdiv(pl.cdiv(batch, n_tiles), 128) * 128
    return block_b, n_tiles * block_b, n_tiles


# ----------------------------------------------------------------------------
# Wrapper: tiling, pallas_call, unpacking.  Takes pre-packed params.
# ----------------------------------------------------------------------------
def actor_critic_forward(state, packed):
    """Fused ActorCritic forward. Returns (mean [B,A], std [B,A], value [B])."""
    B, num_inputs = state.shape
    dims = packed["dims"]
    A = dims["num_actions"]
    R = dims["out_rows"]
    Hp = dims["hidden_pad"]

    block_b, b_padded, n_tiles = _tile_batch(B)
    if b_padded != B:
        state = jnp.pad(state, ((0, b_padded - B), (0, 0)))

    tensors = packed["tensors"]
    const2d = lambda i: (0, 0)             # weights/biases: VMEM-resident blocks
    in_specs = [pl.BlockSpec((block_b, num_inputs), lambda i: (i, 0))]
    in_specs += [pl.BlockSpec(t.shape, const2d) for t in tensors]

    kernel = functools.partial(_actor_critic_kernel, hidden_pad=Hp)

    out_t = pl.pallas_call(
        kernel,
        grid=(n_tiles,),
        in_specs=in_specs,
        # Transposed output: [out_rows, batch] with batch on the lane axis ->
        # ~16x less HBM writeback than the previous [B, 128] f32 slab.
        out_specs=pl.BlockSpec((R, block_b), lambda i: (0, i)),
        out_shape=jax.ShapeDtypeStruct((R, b_padded), jnp.float32),
        compiler_params=pltpu.CompilerParams(
            dimension_semantics=("parallel",),
            vmem_limit_bytes=32 * 1024 * 1024,
        ),
    )(state, *tensors)

    mean = out_t[:A, :B].T                 # tiny XLA transpose outside the kernel
    value = out_t[A, :B]
    # std = exp(log_std) is state-independent -> computed outside the kernel.
    std = jnp.broadcast_to(jnp.exp(packed["log_std"]), mean.shape)
    return mean, std, value


# ----------------------------------------------------------------------------
# Deterministic parameter init (mirrors weights_init_ orthogonal + zero bias).
# ----------------------------------------------------------------------------
def _orthogonal(key, out_dim, in_dim, gain):
    a = jax.random.normal(key, (max(out_dim, in_dim), min(out_dim, in_dim)),
                          dtype=jnp.float32)
    q, r = jnp.linalg.qr(a)
    q = q * jnp.sign(jnp.diag(r))
    if out_dim < in_dim:
        q = q.T
    return (gain * q[:out_dim, :in_dim]).astype(jnp.float32)


def init_actor_critic_params(key, num_inputs, hidden_dim, num_actions):
    ks = jax.random.split(key, 6)
    g = jnp.sqrt(2.0)
    # stored as [in, out] (transposed relative to torch nn.Linear.weight)
    return {
        # actor (GaussianPolicy)
        "w1a": _orthogonal(ks[0], hidden_dim, num_inputs, g).T,
        "b1a": jnp.zeros((1, hidden_dim), jnp.float32),
        "w2a": _orthogonal(ks[1], hidden_dim, hidden_dim, g).T,
        "b2a": jnp.zeros((1, hidden_dim), jnp.float32),
        "wm": _orthogonal(ks[2], num_actions, hidden_dim, 0.01).T,
        "bm": jnp.zeros((1, num_actions), jnp.float32),
        "log_std": jnp.zeros((1, num_actions), jnp.float32),
        # critic (VNetwork)
        "w1c": _orthogonal(ks[3], hidden_dim, num_inputs, g).T,
        "b1c": jnp.zeros((1, hidden_dim), jnp.float32),
        "w2c": _orthogonal(ks[4], hidden_dim, hidden_dim, g).T,
        "b2c": jnp.zeros((1, hidden_dim), jnp.float32),
        "w3c": _orthogonal(ks[5], 1, hidden_dim, 1.0).T,
        "b3c": jnp.zeros((1, 1), jnp.float32),
    }


# ----------------------------------------------------------------------------
# Pure-JAX reference for validation.
# ----------------------------------------------------------------------------
def actor_critic_reference(state, p):
    xa = jnp.tanh(state @ p["w1a"] + p["b1a"])
    xa = jnp.tanh(xa @ p["w2a"] + p["b2a"])
    mean = xa @ p["wm"] + p["bm"]
    std = jnp.exp(jnp.broadcast_to(p["log_std"], mean.shape))

    xc = jnp.tanh(state @ p["w1c"] + p["b1c"])
    xc = jnp.tanh(xc @ p["w2c"] + p["b2c"])
    value = (xc @ p["w3c"] + p["b3c"])[:, 0]
    return mean, std, value


if __name__ == "__main__":
    B, NUM_INPUTS, HIDDEN, NUM_ACTIONS = 8, 16, 32, 4

    key = jax.random.PRNGKey(0)
    pkey, skey = jax.random.split(key)
    params = init_actor_critic_params(pkey, NUM_INPUTS, HIDDEN, NUM_ACTIONS)
    state = jax.random.normal(skey, (B, NUM_INPUTS), dtype=jnp.float32)

    # Pack once (hoisted out of the per-step path per review).
    packed = pack_params(params)
    packed["tensors"] = jax.block_until_ready(packed["tensors"])

    mean, std, value = actor_critic_forward(state, packed)
    jax.block_until_ready((mean, std, value))

    mean_ref, std_ref, value_ref = actor_critic_reference(state, params)
    assert mean.shape == (B, NUM_ACTIONS)
    assert std.shape == (B, NUM_ACTIONS)
    assert value.shape == (B,)
    assert jnp.allclose(mean, mean_ref, atol=1e-5, rtol=1e-5)
    assert jnp.allclose(std, std_ref, atol=1e-5, rtol=1e-5)
    assert jnp.allclose(value, value_ref, atol=1e-5, rtol=1e-5)

    # TODO(synk): Normal.sample / log_prob / entropy (ActorCritic.sample) are
    # host-side torch.distributions logic; the kernel returns (mean, std,
    # value), which fully parameterize Normal(mean, std).
    print("KERNEL_OK")
</pallas_src>

<mosaic_0001>
module attributes {stable_mosaic.version = 11 : i64} {
  func.func @_actor_critic_kernel(%arg0: i32, %arg1: memref<128x16xf32, #tpu.memory_space<vmem>>, %arg2: memref<16x256xf32, #tpu.memory_space<vmem>>, %arg3: memref<1x256xf32, #tpu.memory_space<vmem>>, %arg4: memref<128x128xf32, #tpu.memory_space<vmem>>, %arg5: memref<1x128xf32, #tpu.memory_space<vmem>>, %arg6: memref<128x128xf32, #tpu.memory_space<vmem>>, %arg7: memref<1x128xf32, #tpu.memory_space<vmem>>, %arg8: memref<8x128xf32, #tpu.memory_space<vmem>>, %arg9: memref<8x128xf32, #tpu.memory_space<vmem>>, %arg10: memref<8x1xf32, #tpu.memory_space<vmem>>, %arg11: memref<8x128xf32, #tpu.memory_space<vmem>>) attributes {dimension_semantics = [#tpu.dimension_semantics<parallel>], iteration_bounds = array<i64: 1>, scalar_prefetch = 0 : i64, scratch_operands = 0 : i64, tpu.core_type = #tpu.core_type<tc>, window_params = [{transform_indices = @transform_0, window_bounds = array<i64: 128, 16>}, {pipeline_mode = #tpu.pipeline_mode<synchronous>, transform_indices = @transform_1, window_bounds = array<i64: 16, 256>}, {pipeline_mode = #tpu.pipeline_mode<synchronous>, transform_indices = @transform_2, window_bounds = array<i64: 1, 256>}, {pipeline_mode = #tpu.pipeline_mode<synchronous>, transform_indices = @transform_3, window_bounds = array<i64: 128, 128>}, {pipeline_mode = #tpu.pipeline_mode<synchronous>, transform_indices = @transform_4, window_bounds = array<i64: 1, 128>}, {pipeline_mode = #tpu.pipeline_mode<synchronous>, transform_indices = @transform_5, window_bounds = array<i64: 128, 128>}, {pipeline_mode = #tpu.pipeline_mode<synchronous>, transform_indices = @transform_6, window_bounds = array<i64: 1, 128>}, {pipeline_mode = #tpu.pipeline_mode<synchronous>, transform_indices = @transform_7, window_bounds = array<i64: 8, 128>}, {pipeline_mode = #tpu.pipeline_mode<synchronous>, transform_indices = @transform_8, window_bounds = array<i64: 8, 128>}, {pipeline_mode = #tpu.pipeline_mode<synchronous>, transform_indices = @transform_9, window_bounds = array<i64: 8, 1>}, {transform_indices = @transform_10, window_bounds = array<i64: 8, 128>}]} {
    %c0 = arith.constant 0 : index
    %c0_0 = arith.constant 0 : index
    %0 = vector.load %arg1[%c0, %c0_0] : memref<128x16xf32, #tpu.memory_space<vmem>>, vector<128x16xf32>
    %c0_1 = arith.constant 0 : index
    %c0_2 = arith.constant 0 : index
    %1 = vector.load %arg2[%c0_1, %c0_2] : memref<16x256xf32, #tpu.memory_space<vmem>>, vector<16x256xf32>
    %cst = arith.constant dense<0.000000e+00> : vector<128x256xf32>
    %2 = tpu.matmul %0, %1, %cst {dimension_numbers = #tpu.dot_dimension_numbers<[1], [0], [0], [1], [0, 0, 1, 1], [], []>} : vector<128x16xf32>, vector<16x256xf32>, vector<128x256xf32> -> vector<128x256xf32>
    %c0_3 = arith.constant 0 : index
    %c0_4 = arith.constant 0 : index
    %3 = vector.load %arg3[%c0_3, %c0_4] : memref<1x256xf32, #tpu.memory_space<vmem>>, vector<1x256xf32>
    %4 = vector.broadcast %3 : vector<1x256xf32> to vector<128x256xf32>
    %5 = arith.addf %2, %4 : vector<128x256xf32>
    %6 = math.tanh %5 : vector<128x256xf32>
    %7 = vector.extract_strided_slice %6 {offsets = [0, 0], sizes = [128, 128], strides = [1, 1]} : vector<128x256xf32> to vector<128x128xf32>
    %8 = vector.extract_strided_slice %6 {offsets = [0, 128], sizes = [128, 128], strides = [1, 1]} : vector<128x256xf32> to vector<128x128xf32>
    %c0_5 = arith.constant 0 : index
    %c0_6 = arith.constant 0 : index
    %9 = vector.load %arg4[%c0_5, %c0_6] : memref<128x128xf32, #tpu.memory_space<vmem>>, vector<128x128xf32>
    %cst_7 = arith.constant dense<0.000000e+00> : vector<128x128xf32>
    %10 = tpu.matmul %7, %9, %cst_7 {dimension_numbers = #tpu.dot_dimension_numbers<[1], [0], [0], [1], [0, 0, 1, 1], [], []>} : vector<128x128xf32>, vector<128x128xf32>, vector<128x128xf32> -> vector<128x128xf32>
    %c0_8 = arith.constant 0 : index
    %c0_9 = arith.constant 0 : index
    %11 = vector.load %arg5[%c0_8, %c0_9] : memref<1x128xf32, #tpu.memory_space<vmem>>, vector<1x128xf32>
    %12 = vector.broadcast %11 : vector<1x128xf32> to vector<128x128xf32>
    %13 = arith.addf %10, %12 : vector<128x128xf32>
    %14 = math.tanh %13 : vector<128x128xf32>
    %c0_10 = arith.constant 0 : index
    %c0_11 = arith.constant 0 : index
    %15 = vector.load %arg6[%c0_10, %c0_11] : memref<128x128xf32, #tpu.memory_space<vmem>>, vector<128x128xf32>
    %cst_12 = arith.constant dense<0.000000e+00> : vector<128x128xf32>
    %16 = tpu.matmul %8, %15, %cst_12 {dimension_numbers = #tpu.dot_dimension_numbers<[1], [0], [0], [1], [0, 0, 1, 1], [], []>} : vector<128x128xf32>, vector<128x128xf32>, vector<128x128xf32> -> vector<128x128xf32>
    %c0_13 = arith.constant 0 : index
    %c0_14 = arith.constant 0 : index
    %17 = vector.load %arg7[%c0_13, %c0_14] : memref<1x128xf32, #tpu.memory_space<vmem>>, vector<1x128xf32>
    %18 = vector.broadcast %17 : vector<1x128xf32> to vector<128x128xf32>
    %19 = arith.addf %16, %18 : vector<128x128xf32>
    %20 = math.tanh %19 : vector<128x128xf32>
    %c0_15 = arith.constant 0 : index
    %c0_16 = arith.constant 0 : index
    %21 = vector.load %arg8[%c0_15, %c0_16] : memref<8x128xf32, #tpu.memory_space<vmem>>, vector<8x128xf32>
    %22 = tpu.transpose %14, [1, 0] : vector<128x128xf32> -> vector<128x128xf32>
    %cst_17 = arith.constant dense<0.000000e+00> : vector<8x128xf32>
    %23 = tpu.matmul %21, %22, %cst_17 {dimension_numbers = #tpu.dot_dimension_numbers<[1], [0], [0], [1], [0, 0, 1, 1], [], []>} : vector<8x128xf32>, vector<128x128xf32>, vector<8x128xf32> -> vector<8x128xf32>
    %c0_18 = arith.constant 0 : index
    %c0_19 = arith.constant 0 : index
    %24 = vector.load %arg9[%c0_18, %c0_19] : memref<8x128xf32, #tpu.memory_space<vmem>>, vector<8x128xf32>
    %25 = tpu.transpose %20, [1, 0] : vector<128x128xf32> -> vector<128x128xf32>
    %cst_20 = arith.constant dense<0.000000e+00> : vector<8x128xf32>
    %26 = tpu.matmul %24, %25, %cst_20 {dimension_numbers = #tpu.dot_dimension_numbers<[1], [0], [0], [1], [0, 0, 1, 1], [], []>} : vector<8x128xf32>, vector<128x128xf32>, vector<8x128xf32> -> vector<8x128xf32>
    %27 = arith.addf %23, %26 : vector<8x128xf32>
    %c0_21 = arith.constant 0 : index
    %c0_22 = arith.constant 0 : index
    %28 = vector.load %arg10[%c0_21, %c0_22] : memref<8x1xf32, #tpu.memory_space<vmem>>, vector<8x1xf32>
    %29 = vector.broadcast %28 : vector<8x1xf32> to vector<8x128xf32>
    %30 = arith.addf %27, %29 : vector<8x128xf32>
    %c0_23 = arith.constant 0 : index
    %c0_24 = arith.constant 0 : index
    %31 = vector.load %arg11[%c0_23, %c0_24] : memref<8x128xf32, #tpu.memory_space<vmem>>, vector<8x128xf32>
    tpu.vector_store %arg11[%c0_23, %c0_24], %30 {strides = array<i32>} : memref<8x128xf32, #tpu.memory_space<vmem>>, vector<8x128xf32>,
    return
  }
  func.func @transform_0(%arg0: i32) -> (i32, i32) {
    %c0_i32 = arith.constant 0 : i32
    %c0_i32_0 = arith.constant 0 : i32
    return %arg0, %c0_i32 : i32, i32
  }
  func.func @transform_1(%arg0: i32) -> (i32, i32) {
    %c0_i32 = arith.constant 0 : i32
    %c0_i32_0 = arith.constant 0 : i32
    %c0_i32_1 = arith.constant 0 : i32
    return %c0_i32, %c0_i32_0 : i32, i32
  }
  func.func @transform_2(%arg0: i32) -> (i32, i32) {
    %c0_i32 = arith.constant 0 : i32
    %c0_i32_0 = arith.constant 0 : i32
    %c0_i32_1 = arith.constant 0 : i32
    return %c0_i32, %c0_i32_0 : i32, i32
  }
  func.func @transform_3(%arg0: i32) -> (i32, i32) {
    %c0_i32 = arith.constant 0 : i32
    %c0_i32_0 = arith.constant 0 : i32
    %c0_i32_1 = arith.constant 0 : i32
    return %c0_i32, %c0_i32_0 : i32, i32
  }
  func.func @transform_4(%arg0: i32) -> (i32, i32) {
    %c0_i32 = arith.constant 0 : i32
    %c0_i32_0 = arith.constant 0 : i32
    %c0_i32_1 = arith.constant 0 : i32
    return %c0_i32, %c0_i32_0 : i32, i32
  }
  func.func @transform_5(%arg0: i32) -> (i32, i32) {
    %c0_i32 = arith.constant 0 : i32
    %c0_i32_0 = arith.constant 0 : i32
    %c0_i32_1 = arith.constant 0 : i32
    return %c0_i32, %c0_i32_0 : i32, i32
  }
  func.func @transform_6(%arg0: i32) -> (i32, i32) {
    %c0_i32 = arith.constant 0 : i32
    %c0_i32_0 = arith.constant 0 : i32
    %c0_i32_1 = arith.constant 0 : i32
    return %c0_i32, %c0_i32_0 : i32, i32
  }
  func.func @transform_7(%arg0: i32) -> (i32, i32) {
    %c0_i32 = arith.constant 0 : i32
    %c0_i32_0 = arith.constant 0 : i32
    %c0_i32_1 = arith.constant 0 : i32
    return %c0_i32, %c0_i32_0 : i32, i32
  }
  func.func @transform_8(%arg0: i32) -> (i32, i32) {
    %c0_i32 = arith.constant 0 : i32
    %c0_i32_0 = arith.constant 0 : i32
    %c0_i32_1 = arith.constant 0 : i32
    return %c0_i32, %c0_i32_0 : i32, i32
  }
  func.func @transform_9(%arg0: i32) -> (i32, i32) {
    %c0_i32 = arith.constant 0 : i32
    %c0_i32_0 = arith.constant 0 : i32
    %c0_i32_1 = arith.constant 0 : i32
    return %c0_i32, %c0_i32_0 : i32, i32
  }
  func.func @transform_10(%arg0: i32) -> (i32, i32) {
    %c0_i32 = arith.constant 0 : i32
    %c0_i32_0 = arith.constant 0 : i32
    return %c0_i32, %arg0 : i32, i32
  }
}

</mosaic_0001>

<bundles_post_ra>
// kernel: tpu_custom_call.1
= control target key start
LH: loop header
LB: loop body
LE: loop exit
PB: predicated region body
PF: predicated region fallthrough
CT: control target
= control target key end

     0   :  { %15 = vsyncpa [#allocation3], 0  ;;  %s1927_s0 = inlined_call_operand.vmem [shape: f32[128,16], index: 0, kind: input, shape index: {}]   ;;  %s1928_s1 = inlined_call_operand.vmem [shape: f32[16,256], index: 1, kind: input, shape index: {}]   ;;  %s1929_s2 = inlined_call_operand.hbm [shape: f32[1,256], index: 2, kind: input, shape index: {}]   ;;  %s1930_s3 = inlined_call_operand.vmem [shape: f32[128,128], index: 3, kind: input, shape index: {}]   ;;  %s1931_s4 = inlined_call_operand.hbm [shape: f32[1,128], index: 4, kind: input, shape index: {}]   ;;  %s1932_s5 = inlined_call_operand.hbm [shape: f32[128,128], index: 5, kind: input, shape index: {}]   ;;  %s1933_s6 = inlined_call_operand.vmem [shape: f32[1,128], index: 6, kind: input, shape index: {}]   ;;  %s1934_s7 = inlined_call_operand.vmem [shape: f32[8,128], index: 7, kind: input, shape index: {}]   ;;  %s1935_s8 = inlined_call_operand.vmem [shape: f32[8,128], index: 8, kind: input, shape index: {}]   ;;  %s1936_s9 = inlined_call_operand.vmem [shape: f32[8,1], index: 9, kind: input, shape index: {}]   ;;  %s1937_s10 = inlined_call_operand.hbm [shape: f32[8,128], index: 10, kind: output, shape index: {}]  }
   0x1   :  { %16 = vsyncpa [#allocation6], 0 }
   0x2   :  { %17 = vsyncpa [#allocation4], 0  ;;  %s1528_s13 = smov [#allocation5]   ;;  %s1529_s15 = smov [#allocation2]  }
   0x3   :  { %s40_s14 = sshll.u32 %s1528_s13, 4  ;;  %s28_s16 = sshll.u32 %s1529_s15, 4  ;;  %s41_s14 = int_to_ptr.vmem [resolvable:$true] %s40_s14  ;;  %s29_s16 = int_to_ptr.vmem [resolvable:$true] %s28_s16 }
   0x4   :  { %s1434_s19 = scalar_lea.hbm %s1931_s4, 16 }
   0x5   :  { %p1435_p0 = scmp.ne.s32.totalorder %s1931_s4, %s1434_s19  ;;  %p1438_p1 = scmp.lt.u32.totalorder %s1434_s19, %s1931_s4 }
   0x7   :  { %p1440_p2 = pnand %p1438_p1, %p1435_p0 }
   0x9   :  { %1443 = shalt.err (!%p1440_p2)
}
   0xa   :  { %s1444_s24 = scalar_lea.vmem %s41_s14, 16  ;;  %s1448_s25 = scalar_lea.vmem %s41_s14, 32 }
   0xb   :  { %p1445_p3 = scmp.ne.s32.totalorder %s41_s14, %s1444_s24  ;;  %p1449_p4 = scmp.lt.s32.totalorder %s41_s14, %s41_s14 }
   0xc   :  { %p1450_p5 = scmp.lt.s32.totalorder %s1448_s25, %s1444_s24 }
   0xe   :  { %p1451_p6 = por %p1450_p5, %p1449_p4 }
  0x10   :  { %p1452_p7 = pnand %p1451_p6, %p1445_p3 }
  0x12   :  { %1455 = shalt.err (!%p1452_p7)
}
  0x13   :  { %43 = dma.hbm_to_vmem [thread:$0]  %s1931_s4, 16, %s41_s14, [#allocation6]  }
  0x14   :  { %s1456_s30 = scalar_lea.hbm %s1929_s2, 32 }
  0x15   :  { %p1457_p8 = scmp.ne.s32.totalorder %s1929_s2, %s1456_s30  ;;  %p1460_p9 = scmp.lt.u32.totalorder %s1456_s30, %s1929_s2 }
  0x17   :  { %p1462_p10 = pnand %p1460_p9, %p1457_p8 }
  0x19   :  { %1465 = shalt.err (!%p1462_p10)
}
  0x1a   :  { %s1466_s17 = scalar_lea.vmem %s29_s16, 32  ;;  %p1471_p12 = scmp.lt.s32.totalorder %s29_s16, %s29_s16 }
  0x1b   :  { %p1467_p11 = scmp.ne.s32.totalorder %s29_s16, %s1466_s17  ;;  %p1472_p13 = scmp.lt.s32.totalorder %s1466_s17, %s1466_s17 }
  0x1d   :  { %p1473_p0 = por %p1472_p13, %p1471_p12 }
  0x1f   :  { %p1474_p1 = pnand %p1473_p0, %p1467_p11 }
  0x21   :  { %1477 = shalt.err (!%p1474_p1)
}
  0x22   :  { %31 = dma.hbm_to_vmem [thread:$0]  %s1929_s2, 32, %s29_s16, [#allocation3]  }
  0x23   :  { %s1530_s18 = smov [#allocation7]   ;;  %s1478_s22 = scalar_lea.hbm %s1932_s5, 2048 }
  0x24   :  { %s49_s19 = sshll.u32 %s1530_s18, 4  ;;  %p1479_p2 = scmp.ne.s32.totalorder %s1932_s5, %s1478_s22  ;;  %s50_s19 = int_to_ptr.vmem [resolvable:$true] %s49_s19 }
  0x25   :  { %p1482_p3 = scmp.lt.u32.totalorder %s1478_s22, %s1932_s5 }
  0x27   :  { %p1484_p4 = pnand %p1482_p3, %p1479_p2 }
  0x29   :  { %1487 = shalt.err (!%p1484_p4)
}
  0x2a   :  { %s1488_s27 = scalar_lea.vmem %s50_s19, 2048  ;;  %p1493_p6 = scmp.lt.s32.totalorder %s50_s19, %s50_s19 }
  0x2b   :  { %p1489_p5 = scmp.ne.s32.totalorder %s50_s19, %s1488_s27  ;;  %p1494_p7 = scmp.lt.s32.totalorder %s1488_s27, %s1488_s27 }
  0x2d   :  { %p1495_p8 = por %p1494_p7, %p1493_p6 }
  0x2f   :  { %p1496_p9 = pnand %p1495_p8, %p1489_p5 }
  0x31   :  { %1499 = shalt.err (!%p1496_p9)
}
  0x32   :  { %s1531_s2 = smov 128   ;;  %s1532_s16 = smov 8  }
  0x33   :  { %55 = dma.hbm_to_vmem [thread:$0]  %s1932_s5, 2048, %s50_s19, [#allocation6], %s1531_s2, %s1531_s2, %s1532_s16  }
  0x34   :  { %1522 = dma.done.wait [#allocation3], 32  }
  0x35   :  { %1523 = vsyncadd [#allocation3], 4294967264 }
  0x36   :  { %1524 = dma.done.wait [#allocation6], 2064  }
  0x37   :  { %1525 = vsyncadd [#allocation6], 4294965232  ;;  %v1533_v0 = vmov 0.0   ;;  %v90_v1 = vld [vmem:[%s1928_s1 + $0x8] sm:$0xff]  ;;  %v92_v2 = vld [vmem:[%s1928_s1 + $0x18] sm:$0xff]  ;;  %vm105_vm0 = vcmask 130048   ;;  %v95_v50 = vlaneseq }
  0x38   :  { %218 = vmatprep.mubr.f32.mxu0 %v1533_v0  ;;  %v89_v3 = vld [vmem:[%s1928_s1] sm:$0xff]  ;;  %v1179_v4 = vpack.c.bf16 %v92_v2, %v90_v1  ;;  %v91_v5 = vld [vmem:[%s1928_s1 + $0x10] sm:$0xff]  ;;  %v348_v9 = vld [vmem:[%s1930_s3 + $0x8] sm:$0xff]  ;;  %vm1535_vm1 = vmmov 0   ;;  %s1537_s13 = smov [#allocation8]  }
  0x39   :  { %v1181_v6 = vpack.c.bf16 %v91_v5, %v89_v3  ;;  %v73_v7 = vld [vmem:[%s1927_s0] sm:$0xff]  ;;  %v349_v10 = vld [vmem:[%s1930_s3 + $0x10] sm:$0xff]  ;;  %v350_v11 = vld [vmem:[%s1930_s3 + $0x18] sm:$0xff]  ;;  %v1769_v51 = vshrl.u32 %v95_v50, 7  ;;  %s871_s15 = sshll.u32 %s1537_s13, 4  ;;  %s872_s15 = int_to_ptr.vmem [resolvable:$true] %s871_s15 }
  0x3a   :  { %1180 = vmatprep.subr.bf16.mxu0 %v1179_v4  ;;  %v347_v8 = vld [vmem:[%s1930_s3] sm:$0xff]  ;;  %v74_v12 = vld [vmem:[%s1927_s0 + $0x8] sm:$0xff]  ;;  %v1187_v14 = vpack.c.bf16 %v350_v11, %v349_v10  ;;  %v75_v17 = vld [vmem:[%s1927_s0 + $0x10] sm:$0xff]  ;;  %s1500_s17 = scalar_lea.vmem %s872_s15, 128  ;;  %p1505_p11 = scmp.lt.s32.totalorder %s872_s15, %s872_s15 }
  0x3b   :  { %1182 = vmatpush1.bf16.msra.mxu0 %v1181_v6  ;;  %v1183_v13 = vpack.c.bf16 %v348_v9, %v347_v8  ;;  %v351_v15 = vld [vmem:[%s1930_s3 + $0x20] sm:$0xff]  ;;  %v352_v16 = vld [vmem:[%s1930_s3 + $0x28] sm:$0xff]  ;;  %v353_v19 = vld [vmem:[%s1930_s3 + $0x30] sm:$0xff]  ;;  %v97_v52 = vsub.s32 0, %v1769_v51  ;;  %p1501_p10 = scmp.ne.s32.totalorder %s872_s15, %s1500_s17  ;;  %p1506_p12 = scmp.lt.s32.totalorder %s1500_s17, %s1500_s17 }
  0x3c   :  { %v1191_v18 = vpack.c.bf16 %v352_v16, %v351_v15  ;;  %v354_v20 = vld [vmem:[%s1930_s3 + $0x38] sm:$0xff]  ;;  %v77_v23 = vld [vmem:[%s1927_s0 + $0x20] sm:$0xff]  ;;  %v78_v24 = vld [vmem:[%s1927_s0 + $0x28] sm:$0xff] }
  0x3d   :  { %1184 = vmatprep.subr.bf16.mxu1 %v1183_v13  ;;  %v76_v21 = vld [vmem:[%s1927_s0 + $0x18] sm:$0xff]  ;;  %v1195_v22 = vpack.c.bf16 %v354_v20, %v353_v19  ;;  %v79_v25 = vld [vmem:[%s1927_s0 + $0x30] sm:$0xff]  ;;  %v81_v27 = vld [vmem:[%s1927_s0 + $0x40] sm:$0xff]  ;;  %p1507_p13 = por %p1506_p12, %p1505_p11 }
  0x3e   :  { %881 = vmatmul.mubr.msk.f32.vlgmr.msra.gmra.mrb[0].mxu0 %vm105_vm0, %v73_v7  ;;  %1186 = vmatpush3.bf16.msra.mxu1 %v1183_v13  ;;  %v80_v26 = vld [vmem:[%s1927_s0 + $0x38] sm:$0xff]  ;;  %v82_v28 = vld [vmem:[%s1927_s0 + $0x48] sm:$0xff]  ;;  %v83_v29 = vld [vmem:[%s1927_s0 + $0x50] sm:$0xff] }
  0x3f   :  { %224 = vmatprep.mubr.f32.mxu0 %v1533_v0  ;;  %1188 = vmatprep.subr.bf16.mxu1 %v1187_v14  ;;  %v84_v30 = vld [vmem:[%s1927_s0 + $0x58] sm:$0xff]  ;;  %v85_v31 = vld [vmem:[%s1927_s0 + $0x60] sm:$0xff]  ;;  %v86_v32 = vld [vmem:[%s1927_s0 + $0x68] sm:$0xff]  ;;  %p1508_p0 = pnand %p1507_p13, %p1501_p10 }
  0x40   :  { %v87_v33 = vld [vmem:[%s1927_s0 + $0x70] sm:$0xff]  ;;  %v88_v34 = vld [vmem:[%s1927_s0 + $0x78] sm:$0xff]  ;;  %v355_v35 = vld [vmem:[%s1930_s3 + $0x40] sm:$0xff] }
  0x41   :  { %v356_v36 = vld [vmem:[%s1930_s3 + $0x48] sm:$0xff]  ;;  %v357_v38 = vld [vmem:[%s1930_s3 + $0x50] sm:$0xff]  ;;  %v358_v39 = vld [vmem:[%s1930_s3 + $0x58] sm:$0xff] }
  0x42   :  { %882 = vmatmul.mubr.msk.f32.gmra.mrb[2].mxu0 %vm105_vm0, %v74_v12  ;;  %1190 = vmatpush3.bf16.msra.mxu1 %v1187_v14  ;;  %v1199_v37 = vpack.c.bf16 %v356_v36, %v355_v35  ;;  %v1203_v40 = vpack.c.bf16 %v358_v39, %v357_v38  ;;  %v359_v41 = vld [vmem:[%s1930_s3 + $0x60] sm:$0xff]  ;;  %v360_v42 = vld [vmem:[%s1930_s3 + $0x68] sm:$0xff]  ;;  %v361_v44 = vld [vmem:[%s1930_s3 + $0x70] sm:$0xff] }
  0x43   :  { %230 = vmatprep.mubr.f32.mxu0 %v1533_v0  ;;  %1192 = vmatprep.subr.bf16.mxu1 %v1191_v18  ;;  %v1207_v43 = vpack.c.bf16 %v360_v42, %v359_v41  ;;  %v362_v45 = vld [vmem:[%s1930_s3 + $0x78] sm:$0xff]  ;;  %v531_v47 = vld [vmem:[#allocation7] sm:$0xff]  ;;  %v532_v48 = vld [vmem:[#allocation7 + $0x8] sm:$0xff] }
  0x44   :  { %v1211_v46 = vpack.c.bf16 %v362_v45, %v361_v44  ;;  %v1215_v49 = vpack.c.bf16 %v532_v48, %v531_v47  ;;  %v1772_v53 = vld [vmem:[#allocation2] sm:$0x3]  ;;  %v533_v5 = vld [vmem:[#allocation7 + $0x10] sm:$0xff]  ;;  %v535_v12 = vld [vmem:[#allocation7 + $0x20] sm:$0xff] }
  0x45   :  { %v1775_v54 = vrot.slane %v1772_v53, %v97_v52  ;;  %v534_v6 = vld [vmem:[#allocation7 + $0x18] sm:$0xff]  ;;  %v536_v13 = vld [vmem:[#allocation7 + $0x28] sm:$0xff]  ;;  %v537_v19 = vld [vmem:[#allocation7 + $0x30] sm:$0xff] }
  0x46   :  { %883 = vmatmul.mubr.msk.f32.gmra.mrb[4].mxu0 %vm105_vm0, %v75_v17  ;;  %1194 = vmatpush3.bf16.msra.mxu1 %v1191_v18  ;;  %v1219_v8 = vpack.c.bf16 %v534_v6, %v533_v5  ;;  %v1223_v15 = vpack.c.bf16 %v536_v13, %v535_v12  ;;  %v538_v20 = vld [vmem:[#allocation7 + $0x38] sm:$0xff]  ;;  %v544_v41 = vld [vmem:[#allocation7 + $0x68] sm:$0xff]  ;;  %v545_v47 = vld [vmem:[#allocation7 + $0x70] sm:$0xff]  ;;  %v101_v6 = vsub.s32 1, %v1769_v51 }
  0x47   :  { %236 = vmatprep.mubr.f32.mxu0 %v1533_v0  ;;  %1196 = vmatprep.subr.bf16.mxu1 %v1195_v22  ;;  %v546_v48 = vld [vmem:[#allocation7 + $0x78] sm:$0xff] }
  0x48   :  { %v1243_v50 = vpack.c.bf16 %v546_v48, %v545_v47  ;;  %v1817_v12 = vrot.slane %v1772_v53, %v101_v6  ;;  %v1534_v48 = vmov 0.0|0.0  }
  0x49   :  { %1247 = vmatprep.subr.bf16.mxu0 %v1534_v48 }
  0x4a   :  { %884 = vmatmul.mubr.msk.f32.gmra.mrb[6].mxu0 %vm105_vm0, %v76_v21  ;;  %1198 = vmatpush3.bf16.msra.mxu1 %v1195_v22  ;;  %v1227_v22 = vpack.c.bf16 %v538_v20, %v537_v19 }
  0x4b   :  { %242 = vmatprep.mubr.f32.mxu0 %v1533_v0  ;;  %1200 = vmatprep.subr.bf16.mxu1 %v1199_v37 }
  0x4e   :  { %885 = vmatmul.mubr.msk.f32.gmra.mrb[8].mxu0 %vm105_vm0, %v77_v23  ;;  %1202 = vmatpush3.bf16.msra.mxu1 %v1199_v37 }
  0x4f   :  { %248 = vmatprep.mubr.f32.mxu0 %v1533_v0  ;;  %1204 = vmatprep.subr.bf16.mxu1 %v1203_v40 }
  0x52   :  { %886 = vmatmul.mubr.msk.f32.gmra.mrb[10].mxu0 %vm105_vm0, %v78_v24  ;;  %1206 = vmatpush3.bf16.msra.mxu1 %v1203_v40  ;;  %v543_v40 = vld [vmem:[#allocation7 + $0x60] sm:$0xff] }
  0x53   :  { %254 = vmatprep.mubr.f32.mxu0 %v1533_v0  ;;  %1208 = vmatprep.subr.bf16.mxu1 %v1207_v43 }
  0x56   :  { %887 = vmatmul.mubr.msk.f32.gmra.mrb[12].mxu0 %vm105_vm0, %v79_v25  ;;  %1210 = vmatpush3.bf16.msra.mxu1 %v1207_v43  ;;  %v1239_v43 = vpack.c.bf16 %v544_v41, %v543_v40 }
  0x57   :  { %260 = vmatprep.mubr.f32.mxu0 %v1533_v0  ;;  %1212 = vmatprep.subr.bf16.mxu1 %v1211_v46 }
  0x5a   :  { %888 = vmatmul.mubr.msk.f32.gmra.mrb[14].mxu0 %vm105_vm0, %v80_v26  ;;  %1214 = vmatpush3.bf16.msra.mxu1 %v1211_v46  ;;  %v539_v26 = vld [vmem:[#allocation7 + $0x40] sm:$0xff] }
  0x5b   :  { %266 = vmatprep.mubr.f32.mxu0 %v1533_v0  ;;  %1216 = vmatprep.subr.bf16.mxu1 %v1215_v49 }
  0x5e   :  { %889 = vmatmul.mubr.msk.f32.gmra.mrb[16].mxu0 %vm105_vm0, %v81_v27  ;;  %v540_v27 = vld [vmem:[#allocation7 + $0x48] sm:$0xff] }
  0x5f   :  { %272 = vmatprep.mubr.f32.mxu0 %v1533_v0 }
  0x62   :  { %890 = vmatmul.mubr.msk.f32.gmra.mrb[18].mxu0 %vm105_vm0, %v82_v28 }
  0x63   :  { %278 = vmatprep.mubr.f32.mxu0 %v1533_v0 }
  0x66   :  { %891 = vmatmul.mubr.msk.f32.gmra.mrb[20].mxu0 %vm105_vm0, %v83_v29  ;;  %v1231_v29 = vpack.c.bf16 %v540_v27, %v539_v26 }
  0x67   :  { %284 = vmatprep.mubr.f32.mxu0 %v1533_v0 }
  0x6a   :  { %892 = vmatmul.mubr.msk.f32.gmra.mrb[22].mxu0 %vm105_vm0, %v84_v30 }
  0x6b   :  { %290 = vmatprep.mubr.f32.mxu0 %v1533_v0 }
  0x6e   :  { %893 = vmatmul.mubr.msk.f32.gmra.mrb[24].mxu0 %vm105_vm0, %v85_v31 }
  0x6f   :  { %296 = vmatprep.mubr.f32.mxu0 %v1533_v0 }
  0x72   :  { %894 = vmatmul.mubr.msk.f32.gmra.mrb[26].mxu0 %vm105_vm0, %v86_v32 }
  0x73   :  { %302 = vmatprep.mubr.f32.mxu0 %v1533_v0 }
  0x76   :  { %895 = vmatmul.mubr.msk.f32.gmra.mrb[28].mxu0 %vm105_vm0, %v87_v33  ;;  %v541_v33 = vld [vmem:[#allocation7 + $0x50] sm:$0xff] }
  0x77   :  { %308 = vmatprep.mubr.f32.mxu0 %v1533_v0 }
  0x7a   :  { %896 = vmatmul.mubr.msk.f32.gmra.mrb[30].mxu0 %vm105_vm0, %v88_v34  ;;  %v542_v34 = vld [vmem:[#allocation7 + $0x58] sm:$0xff] }
  0x7b   :  { %v1235_v36 = vpack.c.bf16 %v542_v34, %v541_v33  ;;  %1141 = vmatprep.mubr.msk.f32.mxu0 %vm1535_vm1, %v1533_v0 }
 0x111   :  { %v220_v55 = vpop.f32.mrb[0].mxu0 }
 0x112   :  { %v221_v56 = vadd.f32 %v220_v55, %v1775_v54  ;;  %v1778_v57 = vpop.f32.mrb[1].mxu0 }
 0x113   :  { %v223_v51 = vadd.f32 %v1778_v57, %v1817_v12 }
 0x114   :  { %1306 = vtanh.f32 %v221_v56 }
 0x115   :  { %v226_v58 = vpop.f32.mrb[2].mxu0 }
 0x116   :  { %v227_v59 = vadd.f32 %v226_v58, %v1775_v54  ;;  %v1781_v60 = vpop.f32.mrb[3].mxu0 }
 0x117   :  { %v229_v53 = vadd.f32 %v1781_v60, %v1817_v12 }
 0x118   :  { %1308 = vtanh.f32 %v227_v59 }
 0x119   :  { %v232_v61 = vpop.f32.mrb[4].mxu0 }
 0x11a   :  { %v233_v62 = vadd.f32 %v232_v61, %v1775_v54  ;;  %v1784_v63 = vpop.f32.mrb[5].mxu0 }
 0x11c   :  { %1310 = vtanh.f32 %v233_v62 }
 0x11d   :  { %v238_v1 = vpop.f32.mrb[6].mxu0 }
 0x11e   :  { %v1307_v2 = vpop.eup %1306  ;;  %v239_v3 = vadd.f32 %v238_v1, %v1775_v54  ;;  %v1787_v4 = vpop.f32.mrb[7].mxu0 }
 0x11f   :  { %1029 = vmatprep.mubr.f32.mxu1 %v1307_v2  ;;  %v241_v57 = vadd.f32 %v1787_v4, %v1817_v12 }
 0x120   :  { %1312 = vtanh.f32 %v239_v3 }
 0x121   :  { %v244_v7 = vpop.f32.mrb[8].mxu0 }
 0x122   :  { %v1309_v9 = vpop.eup %1308  ;;  %v245_v10 = vadd.f32 %v244_v7, %v1775_v54  ;;  %v1790_v11 = vpop.f32.mrb[9].mxu0 }
 0x123   :  { %1030 = vmatmul.mubr.f32.vlgmr.msra.gmra.mrb[0].mxu1 %v1309_v9 }
 0x124   :  { %1314 = vtanh.f32 %v245_v10  ;;  %1218 = vmatpush3.bf16.msra.mxu1 %v1215_v49 }
 0x125   :  { %v250_v14 = vpop.f32.mrb[10].mxu0  ;;  %1220 = vmatprep.subr.bf16.mxu1 %v1219_v8 }
 0x126   :  { %v1311_v16 = vpop.eup %1310  ;;  %v251_v17 = vadd.f32 %v250_v14, %v1775_v54  ;;  %v1793_v18 = vpop.f32.mrb[11].mxu0 }
 0x127   :  { %1032 = vmatprep.mubr.f32.mxu1 %v1311_v16  ;;  %v253_v60 = vadd.f32 %v1793_v18, %v1817_v12 }
 0x128   :  { %1316 = vtanh.f32 %v251_v17  ;;  %1222 = vmatpush3.bf16.msra.mxu1 %v1219_v8 }
 0x129   :  { %v256_v21 = vpop.f32.mrb[12].mxu0  ;;  %1224 = vmatprep.subr.bf16.mxu1 %v1223_v15 }
 0x12a   :  { %v1313_v23 = vpop.eup %1312  ;;  %v257_v24 = vadd.f32 %v256_v21, %v1775_v54  ;;  %v1796_v25 = vpop.f32.mrb[13].mxu0 }
 0x12b   :  { %1033 = vmatmul.mubr.f32.gmra.mrb[2].mxu1 %v1313_v23 }
 0x12c   :  { %1318 = vtanh.f32 %v257_v24  ;;  %1226 = vmatpush3.bf16.msra.mxu1 %v1223_v15 }
 0x12d   :  { %v262_v28 = vpop.f32.mrb[14].mxu0  ;;  %1228 = vmatprep.subr.bf16.mxu1 %v1227_v22 }
 0x12e   :  { %v1315_v30 = vpop.eup %1314  ;;  %v263_v31 = vadd.f32 %v262_v28, %v1775_v54  ;;  %v1799_v32 = vpop.f32.mrb[15].mxu0 }
 0x12f   :  { %1035 = vmatprep.mubr.f32.mxu1 %v1315_v30  ;;  %v265_v4 = vadd.f32 %v1799_v32, %v1817_v12 }
 0x130   :  { %1320 = vtanh.f32 %v263_v31  ;;  %1230 = vmatpush3.bf16.msra.mxu1 %v1227_v22  ;;  %v235_v22 = vadd.f32 %v1784_v63, %v1817_v12  ;;  %v259_v63 = vadd.f32 %v1796_v25, %v1817_v12 }
 0x131   :  { %v268_v35 = vpop.f32.mrb[16].mxu0  ;;  %1232 = vmatprep.subr.bf16.mxu1 %v1231_v29 }
 0x132   :  { %v1317_v37 = vpop.eup %1316  ;;  %v269_v38 = vadd.f32 %v268_v35, %v1775_v54  ;;  %v1802_v39 = vpop.f32.mrb[17].mxu0 }
 0x133   :  { %1036 = vmatmul.mubr.f32.gmra.mrb[4].mxu1 %v1317_v37 }
 0x134   :  { %1322 = vtanh.f32 %v269_v38  ;;  %1234 = vmatpush3.bf16.msra.mxu1 %v1231_v29 }
 0x135   :  { %v274_v42 = vpop.f32.mrb[18].mxu0  ;;  %1236 = vmatprep.subr.bf16.mxu1 %v1235_v36 }
 0x136   :  { %v1319_v44 = vpop.eup %1318  ;;  %v275_v45 = vadd.f32 %v274_v42, %v1775_v54  ;;  %v1805_v46 = vpop.f32.mrb[19].mxu0 }
 0x137   :  { %1038 = vmatprep.mubr.f32.mxu1 %v1319_v44  ;;  %v277_v18 = vadd.f32 %v1805_v46, %v1817_v12 }
 0x138   :  { %1324 = vtanh.f32 %v275_v45  ;;  %1238 = vmatpush3.bf16.msra.mxu1 %v1235_v36 }
 0x139   :  { %v280_v49 = vpop.f32.mrb[20].mxu0  ;;  %1240 = vmatprep.subr.bf16.mxu1 %v1239_v43 }
 0x13a   :  { %v1321_v52 = vpop.eup %1320  ;;  %v281_v55 = vadd.f32 %v280_v49, %v1775_v54  ;;  %v1808_v56 = vpop.f32.mrb[21].mxu0  ;;  %v1851_v49 = vld [vmem:[#allocation5] ss:$0 sm:$0xff] }
 0x13b   :  { %1039 = vmatmul.mubr.f32.gmra.mrb[6].mxu1 %v1321_v52  ;;  %v283_v25 = vadd.f32 %v1808_v56, %v1817_v12 }
 0x13c   :  { %1326 = vtanh.f32 %v281_v55  ;;  %1242 = vmatpush3.bf16.msra.mxu1 %v1239_v43 }
 0x13d   :  { %v286_v58 = vpop.f32.mrb[22].mxu0  ;;  %1244 = vmatprep.subr.bf16.mxu1 %v1243_v50 }
 0x13e   :  { %v1323_v59 = vpop.eup %1322  ;;  %v287_v61 = vadd.f32 %v286_v58, %v1775_v54  ;;  %v1811_v62 = vpop.f32.mrb[23].mxu0 }
 0x13f   :  { %1041 = vmatprep.mubr.f32.mxu1 %v1323_v59  ;;  %v289_v32 = vadd.f32 %v1811_v62, %v1817_v12 }
 0x140   :  { %1328 = vtanh.f32 %v287_v61  ;;  %1246 = vmatpush3.bf16.msra.mxu1 %v1243_v50 }
 0x141   :  { %v292_v1 = vpop.f32.mrb[24].mxu0  ;;  %1271 = vmatprep.subr.bf16.mxu1 %v1534_v48 }
 0x142   :  { %v1325_v2 = vpop.eup %1324  ;;  %v293_v3 = vadd.f32 %v292_v1, %v1775_v54  ;;  %v294_v5 = vpop.f32.mrb[25].mxu0  ;;  %v857_v1 = vld [vmem:[%s1936_s9] sm:$0xff] }
 0x143   :  { %1042 = vmatmul.mubr.f32.gmra.mrb[8].mxu1 %v1325_v2  ;;  %v295_v33 = vadd.f32 %v294_v5, %v1817_v12 }
 0x144   :  { %1330 = vtanh.f32 %v293_v3  ;;  %v1536_v3 = vmov 0  }
 0x145   :  { %v298_v7 = vpop.f32.mrb[26].mxu0  ;;  %1305 = vset.pattern.permute.xlu0 %v1536_v3 }
 0x146   :  { %v1327_v8 = vpop.eup %1326  ;;  %v299_v9 = vadd.f32 %v298_v7, %v1775_v54  ;;  %v300_v10 = vpop.f32.mrb[27].mxu0  ;;  %860 = vperm.xlu0 %1305, %v857_v1  }
 0x147   :  { %1044 = vmatprep.mubr.f32.mxu1 %v1327_v8  ;;  %v301_v36 = vadd.f32 %v300_v10, %v1817_v12 }
 0x148   :  { %1332 = vtanh.f32 %v299_v9 }
 0x149   :  { %v304_v13 = vpop.f32.mrb[28].mxu0 }
 0x14a   :  { %v1329_v14 = vpop.eup %1328  ;;  %v305_v15 = vadd.f32 %v304_v13, %v1775_v54  ;;  %v306_v16 = vpop.f32.mrb[29].mxu0 }
 0x14b   :  { %1045 = vmatmul.mubr.f32.gmra.mrb[10].mxu1 %v1329_v14  ;;  %v307_v37 = vadd.f32 %v306_v16, %v1817_v12 }
 0x14c   :  { %1334 = vtanh.f32 %v305_v15 }
 0x14d   :  { %v310_v17 = vpop.f32.mrb[30].mxu0 }
 0x14e   :  { %v1331_v19 = vpop.eup %1330  ;;  %v311_v20 = vadd.f32 %v310_v17, %v1775_v54  ;;  %v312_v21 = vpop.f32.mrb[31].mxu0  ;;  %v247_v54 = vadd.f32 %v1790_v11, %v1817_v12  ;;  %v271_v11 = vadd.f32 %v1802_v39, %v1817_v12 }
 0x14f   :  { %1047 = vmatprep.mubr.f32.mxu1 %v1331_v19  ;;  %v313_v40 = vadd.f32 %v312_v21, %v1817_v12 }
 0x150   :  { %1336 = vtanh.f32 %v311_v20 }
 0x151   :  { %1338 = vtanh.f32 %v223_v51 }
 0x152   :  { %v1333_v23 = vpop.eup %1332  ;;  %1340 = vtanh.f32 %v229_v53 }
 0x153   :  { %1048 = vmatmul.mubr.f32.gmra.mrb[12].mxu1 %v1333_v23  ;;  %1342 = vtanh.f32 %v235_v22 }
 0x154   :  { %1344 = vtanh.f32 %v241_v57 }
 0x155   :  { %1346 = vtanh.f32 %v247_v54 }
 0x156   :  { %v1335_v24 = vpop.eup %1334  ;;  %1348 = vtanh.f32 %v253_v60 }
 0x157   :  { %1050 = vmatprep.mubr.f32.mxu1 %v1335_v24  ;;  %1350 = vtanh.f32 %v259_v63 }
 0x158   :  { %1352 = vtanh.f32 %v265_v4 }
 0x159   :  { %1354 = vtanh.f32 %v271_v11 }
 0x15a   :  { %v1337_v26 = vpop.eup %1336  ;;  %1356 = vtanh.f32 %v277_v18 }
 0x15b   :  { %v1339_v27 = vpop.eup %1338  ;;  %1051 = vmatmul.mubr.f32.gmra.mrb[14].mxu1 %v1337_v26  ;;  %1358 = vtanh.f32 %v283_v25 }
 0x15c   :  { %1085 = vmatprep.mubr.f32.mxu1 %v1339_v27  ;;  %v1341_v28 = vpop.eup %1340  ;;  %1360 = vtanh.f32 %v289_v32 }
 0x15d   :  { %v1343_v29 = vpop.eup %1342  ;;  %1362 = vtanh.f32 %v295_v33 }
 0x15e   :  { %v1345_v30 = vpop.eup %1344  ;;  %1364 = vtanh.f32 %v301_v36 }
 0x15f   :  { %1086 = vmatmul.mubr.f32.vlgmr.msra.gmra.mrb[16].mxu1 %v1341_v28  ;;  %v1347_v31 = vpop.eup %1346  ;;  %1366 = vtanh.f32 %v307_v37 }
 0x160   :  { %1088 = vmatprep.mubr.f32.mxu1 %v1343_v29  ;;  %v1349_v34 = vpop.eup %1348  ;;  %1368 = vtanh.f32 %v313_v40 }
 0x161   :  { %v1351_v35 = vpop.eup %1350 }
 0x162   :  { %v1353_v38 = vpop.eup %1352 }
 0x163   :  { %1089 = vmatmul.mubr.f32.gmra.mrb[18].mxu1 %v1345_v30  ;;  %v1355_v39 = vpop.eup %1354 }
 0x164   :  { %1091 = vmatprep.mubr.f32.mxu1 %v1347_v31  ;;  %v1357_v41 = vpop.eup %1356 }
 0x165   :  { %v1359_v42 = vpop.eup %1358 }
 0x166   :  { %v1361_v43 = vpop.eup %1360 }
 0x167   :  { %1092 = vmatmul.mubr.f32.gmra.mrb[20].mxu1 %v1349_v34  ;;  %v1363_v44 = vpop.eup %1362 }
 0x168   :  { %1094 = vmatprep.mubr.f32.mxu1 %v1351_v35  ;;  %v1365_v45 = vpop.eup %1364 }
 0x169   :  { %v1367_v46 = vpop.eup %1366 }
 0x16a   :  { %v1369_v47 = vpop.eup %1368 }
 0x16b   :  { %1095 = vmatmul.mubr.f32.gmra.mrb[22].mxu1 %v1353_v38  ;;  %v1882_v38 = vld [vmem:[%s1933_s6] ss:$0 sm:$0xff] }
 0x16c   :  { %1097 = vmatprep.mubr.f32.mxu1 %v1355_v39 }
 0x16f   :  { %1098 = vmatmul.mubr.f32.gmra.mrb[24].mxu1 %v1357_v41 }
 0x170   :  { %1100 = vmatprep.mubr.f32.mxu1 %v1359_v42 }
 0x173   :  { %1101 = vmatmul.mubr.f32.gmra.mrb[26].mxu1 %v1361_v43 }
 0x174   :  { %1103 = vmatprep.mubr.f32.mxu1 %v1363_v44 }
 0x177   :  { %1104 = vmatmul.mubr.f32.gmra.mrb[28].mxu1 %v1365_v45 }
 0x178   :  { %1106 = vmatprep.mubr.f32.mxu1 %v1367_v46 }
 0x17b   :  { %1107 = vmatmul.mubr.f32.gmra.mrb[30].mxu1 %v1369_v47 }
 0x17c   :  { %1176 = vmatprep.mubr.msk.f32.mxu1 %vm1535_vm1, %v1533_v0 }
 0x1f6   :  { %v1031_v50 = vpop.f32.mrb[0].mxu1 }
 0x1f7   :  { %v442_v52 = vadd.f32 %v1031_v50, %v1851_v49  ;;  %v436_v55 = vpop.f32.mrb[1].mxu1 }
 0x1f8   :  { %v437_v56 = vadd.f32 %v1851_v49, %v436_v55 }
 0x1f9   :  { %1370 = vtanh.f32 %v442_v52 }
 0x1fa   :  { %1372 = vtanh.f32 %v437_v56 }
 0x1fe   :  { %v1034_v58 = vpop.f32.mrb[2].mxu1 }
 0x1ff   :  { %v452_v59 = vadd.f32 %v1034_v58, %v1851_v49  ;;  %v446_v61 = vpop.f32.mrb[3].mxu1 }
 0x200   :  { %v447_v62 = vadd.f32 %v1851_v49, %v446_v61 }
 0x201   :  { %1374 = vtanh.f32 %v452_v59 }
 0x202   :  { %1376 = vtanh.f32 %v447_v62 }
 0x203   :  { %v1371_v2 = vpop.eup %1370 }
 0x204   :  { %v1373_v5 = vpop.eup %1372 }
 0x205   :  { %v1272_v6 = vpack.c.bf16 %v1371_v2, %v1373_v5 }
 0x206   :  { %v1037_v7 = vpop.f32.mrb[4].mxu1 }
 0x207   :  { %v462_v0 = vadd.f32 %v1037_v7, %v1851_v49  ;;  %v456_v8 = vpop.f32.mrb[5].mxu1  ;;  %1273 = vmatpush3.bf16.xpose.msra.mxu1 %v1272_v6 }
 0x208   :  { %v457_v9 = vadd.f32 %v1851_v49, %v456_v8  ;;  %1274 = vmatprep.subr.bf16.mxu1 %v1534_v48 }
 0x209   :  { %1378 = vtanh.f32 %v462_v0 }
 0x20a   :  { %1380 = vtanh.f32 %v457_v9 }
 0x20b   :  { %v1375_v10 = vpop.eup %1374 }
 0x20c   :  { %v1377_v12 = vpop.eup %1376 }
 0x20d   :  { %v1275_v13 = vpack.c.bf16 %v1375_v10, %v1377_v12 }
 0x20e   :  { %v1040_v14 = vpop.f32.mrb[6].mxu1 }
 0x20f   :  { %v472_v15 = vadd.f32 %v1040_v14, %v1851_v49  ;;  %v466_v16 = vpop.f32.mrb[7].mxu1  ;;  %1276 = vmatpush3.bf16.xpose.msra.mxu1 %v1275_v13  ;;  %v715_v13 = vld [vmem:[%s1934_s7] sm:$0xff] }
 0x210   :  { %v467_v51 = vadd.f32 %v1851_v49, %v466_v16  ;;  %1277 = vmatprep.subr.bf16.mxu1 %v1534_v48 }
 0x211   :  { %1382 = vtanh.f32 %v472_v15 }
 0x212   :  { %1384 = vtanh.f32 %v467_v51 }
 0x213   :  { %v1379_v17 = vpop.eup %1378 }
 0x214   :  { %v1381_v19 = vpop.eup %1380 }
 0x215   :  { %v1278_v20 = vpack.c.bf16 %v1379_v17, %v1381_v19 }
 0x216   :  { %v1043_v21 = vpop.f32.mrb[8].mxu1 }
 0x217   :  { %v482_v53 = vadd.f32 %v1043_v21, %v1851_v49  ;;  %v476_v22 = vpop.f32.mrb[9].mxu1  ;;  %1279 = vmatpush3.bf16.xpose.msra.mxu1 %v1278_v20 }
 0x218   :  { %v477_v23 = vadd.f32 %v1851_v49, %v476_v22  ;;  %1280 = vmatprep.subr.bf16.mxu1 %v1534_v48 }
 0x219   :  { %1386 = vtanh.f32 %v482_v53 }
 0x21a   :  { %1388 = vtanh.f32 %v477_v23 }
 0x21b   :  { %v1383_v57 = vpop.eup %1382 }
 0x21c   :  { %v1385_v54 = vpop.eup %1384 }
 0x21d   :  { %v1281_v24 = vpack.c.bf16 %v1383_v57, %v1385_v54 }
 0x21e   :  { %v1046_v60 = vpop.f32.mrb[10].mxu1 }
 0x21f   :  { %v492_v63 = vadd.f32 %v1046_v60, %v1851_v49  ;;  %v486_v26 = vpop.f32.mrb[11].mxu1  ;;  %1282 = vmatpush3.bf16.xpose.msra.mxu1 %v1281_v24 }
 0x220   :  { %v487_v27 = vadd.f32 %v1851_v49, %v486_v26  ;;  %1283 = vmatprep.subr.bf16.mxu1 %v1534_v48 }
 0x221   :  { %1390 = vtanh.f32 %v492_v63 }
 0x222   :  { %1392 = vtanh.f32 %v487_v27 }
 0x223   :  { %v1387_v4 = vpop.eup %1386 }
 0x224   :  { %v1389_v11 = vpop.eup %1388 }
 0x225   :  { %v1284_v28 = vpack.c.bf16 %v1387_v4, %v1389_v11 }
 0x226   :  { %v1049_v29 = vpop.f32.mrb[12].mxu1 }
 0x227   :  { %v502_v18 = vadd.f32 %v1049_v29, %v1851_v49  ;;  %v496_v25 = vpop.f32.mrb[13].mxu1  ;;  %1285 = vmatpush3.bf16.xpose.msra.mxu1 %v1284_v28 }
 0x228   :  { %v497_v30 = vadd.f32 %v1851_v49, %v496_v25  ;;  %1286 = vmatprep.subr.bf16.mxu1 %v1534_v48 }
 0x229   :  { %1394 = vtanh.f32 %v502_v18 }
 0x22a   :  { %1396 = vtanh.f32 %v497_v30 }
 0x22b   :  { %v1391_v31 = vpop.eup %1390 }
 0x22c   :  { %v1393_v32 = vpop.eup %1392 }
 0x22d   :  { %v1287_v33 = vpack.c.bf16 %v1391_v31, %v1393_v32 }
 0x22e   :  { %v1052_v34 = vpop.f32.mrb[14].mxu1 }
 0x22f   :  { %v512_v35 = vadd.f32 %v1052_v34, %v1851_v49  ;;  %v506_v36 = vpop.f32.mrb[15].mxu1  ;;  %1288 = vmatpush3.bf16.xpose.msra.mxu1 %v1287_v33 }
 0x230   :  { %v507_v37 = vadd.f32 %v1851_v49, %v506_v36  ;;  %1289 = vmatprep.subr.bf16.mxu1 %v1534_v48 }
 0x231   :  { %1398 = vtanh.f32 %v512_v35 }
 0x232   :  { %1400 = vtanh.f32 %v507_v37  ;;  %v1087_v39 = vpop.f32.mrb[16].mxu1 }
 0x233   :  { %v1395_v40 = vpop.eup %1394  ;;  %v626_v41 = vadd.f32 %v1087_v39, %v1882_v38  ;;  %v620_v42 = vpop.f32.mrb[17].mxu1 }
 0x234   :  { %v1397_v43 = vpop.eup %1396  ;;  %v621_v44 = vadd.f32 %v1882_v38, %v620_v42 }
 0x235   :  { %1402 = vtanh.f32 %v626_v41  ;;  %v1290_v45 = vpack.c.bf16 %v1395_v40, %v1397_v43  ;;  %v861_v43 = vpop.permute.xlu0 %860 }
 0x236   :  { %1404 = vtanh.f32 %v621_v44  ;;  %v1090_v46 = vpop.f32.mrb[18].mxu1 }
 0x237   :  { %v636_v47 = vadd.f32 %v1090_v46, %v1882_v38  ;;  %v630_v49 = vpop.f32.mrb[19].mxu1  ;;  %1291 = vmatpush3.bf16.xpose.msra.mxu1 %v1290_v45 }
 0x238   :  { %v631_v50 = vadd.f32 %v1882_v38, %v630_v49  ;;  %1292 = vmatprep.subr.bf16.mxu1 %v1534_v48 }
 0x239   :  { %1406 = vtanh.f32 %v636_v47 }
 0x23a   :  { %1408 = vtanh.f32 %v631_v50  ;;  %v1093_v52 = vpop.f32.mrb[20].mxu1 }
 0x23b   :  { %v1399_v55 = vpop.eup %1398  ;;  %v646_v56 = vadd.f32 %v1093_v52, %v1882_v38  ;;  %v640_v58 = vpop.f32.mrb[21].mxu1 }
 0x23c   :  { %v1401_v59 = vpop.eup %1400  ;;  %v641_v61 = vadd.f32 %v1882_v38, %v640_v58 }
 0x23d   :  { %1410 = vtanh.f32 %v646_v56  ;;  %v1293_v62 = vpack.c.bf16 %v1399_v55, %v1401_v59 }
 0x23e   :  { %1412 = vtanh.f32 %v641_v61  ;;  %v1096_v1 = vpop.f32.mrb[22].mxu1 }
 0x23f   :  { %v1403_v2 = vpop.eup %1402  ;;  %v656_v3 = vadd.f32 %v1096_v1, %v1882_v38  ;;  %v650_v5 = vpop.f32.mrb[23].mxu1  ;;  %1294 = vmatpush3.bf16.xpose.msra.mxu1 %v1293_v62 }
 0x240   :  { %v1405_v6 = vpop.eup %1404  ;;  %v651_v7 = vadd.f32 %v1882_v38, %v650_v5 }
 0x241   :  { %1414 = vtanh.f32 %v656_v3  ;;  %v1248_v0 = vpack.c.bf16 %v1403_v2, %v1405_v6 }
 0x242   :  { %1416 = vtanh.f32 %v651_v7  ;;  %v1099_v8 = vpop.f32.mrb[24].mxu1 }
 0x243   :  { %v1407_v9 = vpop.eup %1406  ;;  %v666_v10 = vadd.f32 %v1099_v8, %v1882_v38  ;;  %v660_v12 = vpop.f32.mrb[25].mxu1  ;;  %1249 = vmatpush3.bf16.xpose.msra.mxu0 %v1248_v0 }
 0x244   :  { %v1409_v14 = vpop.eup %1408  ;;  %v661_v15 = vadd.f32 %v1882_v38, %v660_v12  ;;  %1250 = vmatprep.subr.bf16.mxu0 %v1534_v48 }
 0x245   :  { %1418 = vtanh.f32 %v666_v10  ;;  %v1251_v16 = vpack.c.bf16 %v1407_v9, %v1409_v14 }
 0x246   :  { %1420 = vtanh.f32 %v661_v15  ;;  %v1102_v51 = vpop.f32.mrb[26].mxu1  ;;  %1177 = vmatmul.mubr.f32.vlgmr.msra.gmra.mrb[32].mxu1 %v715_v13 }
 0x247   :  { %v1411_v17 = vpop.eup %1410  ;;  %v676_v19 = vadd.f32 %v1102_v51, %v1882_v38  ;;  %v670_v20 = vpop.f32.mrb[27].mxu1 }
 0x248   :  { %v1413_v21 = vpop.eup %1412  ;;  %v671_v53 = vadd.f32 %v1882_v38, %v670_v20 }
 0x249   :  { %1422 = vtanh.f32 %v676_v19  ;;  %v1254_v22 = vpack.c.bf16 %v1411_v17, %v1413_v21 }
 0x24a   :  { %1424 = vtanh.f32 %v671_v53  ;;  %v1105_v23 = vpop.f32.mrb[28].mxu1 }
 0x24b   :  { %v1415_v57 = vpop.eup %1414  ;;  %v686_v54 = vadd.f32 %v1105_v23, %v1882_v38  ;;  %v680_v24 = vpop.f32.mrb[29].mxu1  ;;  %1252 = vmatpush3.bf16.xpose.msra.mxu0 %v1251_v16 }
 0x24c   :  { %v1417_v60 = vpop.eup %1416  ;;  %v681_v63 = vadd.f32 %v1882_v38, %v680_v24  ;;  %1253 = vmatprep.subr.bf16.mxu0 %v1534_v48 }
 0x24d   :  { %1426 = vtanh.f32 %v686_v54  ;;  %v1257_v26 = vpack.c.bf16 %v1415_v57, %v1417_v60 }
 0x24e   :  { %1428 = vtanh.f32 %v681_v63  ;;  %v1108_v27 = vpop.f32.mrb[30].mxu1 }
 0x24f   :  { %v1419_v4 = vpop.eup %1418  ;;  %v696_v11 = vadd.f32 %v1108_v27, %v1882_v38  ;;  %v690_v28 = vpop.f32.mrb[31].mxu1 }
 0x250   :  { %v1421_v29 = vpop.eup %1420  ;;  %v691_v18 = vadd.f32 %v1882_v38, %v690_v28  ;;  %v716_v38 = vld [vmem:[%s1935_s8] sm:$0xff] }
 0x251   :  { %1430 = vtanh.f32 %v696_v11  ;;  %v1260_v25 = vpack.c.bf16 %v1419_v4, %v1421_v29 }
 0x252   :  { %1432 = vtanh.f32 %v691_v18 }
 0x253   :  { %v1423_v30 = vpop.eup %1422  ;;  %1255 = vmatpush3.bf16.xpose.msra.mxu0 %v1254_v22 }
 0x254   :  { %v1425_v31 = vpop.eup %1424  ;;  %1256 = vmatprep.subr.bf16.mxu0 %v1534_v48 }
 0x255   :  { %v1263_v32 = vpack.c.bf16 %v1423_v30, %v1425_v31 }
 0x257   :  { %v1427_v33 = vpop.eup %1426 }
 0x258   :  { %v1429_v34 = vpop.eup %1428 }
 0x259   :  { %v1266_v35 = vpack.c.bf16 %v1427_v33, %v1429_v34 }
 0x25b   :  { %v1431_v36 = vpop.eup %1430  ;;  %1258 = vmatpush3.bf16.xpose.msra.mxu0 %v1257_v26 }
 0x25c   :  { %v1433_v37 = vpop.eup %1432  ;;  %1259 = vmatprep.subr.bf16.mxu0 %v1534_v48 }
 0x25d   :  { %v1269_v39 = vpack.c.bf16 %v1431_v36, %v1433_v37 }
 0x263   :  { %1261 = vmatpush3.bf16.xpose.msra.mxu0 %v1260_v25 }
 0x264   :  { %1262 = vmatprep.subr.bf16.mxu0 %v1534_v48 }
 0x26b   :  { %1264 = vmatpush3.bf16.xpose.msra.mxu0 %v1263_v32 }
 0x26c   :  { %1265 = vmatprep.subr.bf16.mxu0 %v1534_v48 }
 0x273   :  { %1267 = vmatpush3.bf16.xpose.msra.mxu0 %v1266_v35 }
 0x274   :  { %1268 = vmatprep.subr.bf16.mxu0 %v1534_v48 }
 0x27b   :  { %1270 = vmatpush3.bf16.xpose.msra.mxu0 %v1269_v39 }
 0x282   :  { %1142 = vmatmul.mubr.f32.vlgmr.msra.gmra.mrb[32].mxu0 %v716_v38 }
 0x319   :  { %v853_v40 = vpop.f32.mrb[32].mxu1 }
 0x31a   :  { %v1178_v41 = vpop.f32.mrb[33].mxu1 }
 0x355   :  { %v783_v42 = vpop.f32.mrb[32].mxu0 }
 0x356   :  { %v854_v44 = vadd.f32 %v853_v40, %v783_v42  ;;  %v1143_v45 = vpop.f32.mrb[33].mxu0 }
 0x358   :  { %v863_v46 = vadd.f32 %v861_v43, %v854_v44 }
 0x35a   :  { %864 = vst [vmem:[#allocation8] sm:$0xff] %v863_v46 }
 0x35b   :  { %1511 = shalt.err (!%p1508_p0)
}
 0x35c   :  { %s1512_s4 = scalar_lea.hbm %s1937_s10, 128 }
 0x35d   :  { %p1513_p1 = scmp.ne.s32.totalorder %s1937_s10, %s1512_s4  ;;  %p1516_p2 = scmp.lt.u32.totalorder %s1512_s4, %s1937_s10 }
 0x35f   :  { %p1518_p3 = pnand %p1516_p2, %p1513_p1 }
 0x361   :  { %1521 = shalt.err (!%p1518_p3)
}
 0x362   :  { %874 = dma.vmem_to_hbm [thread:$0]  %s872_s15, 128, %s1937_s10, [#allocation4]  }
 0x363   :  { %1526 = dma.done.wait [#allocation4], 128  }
 0x364   :  { %1527 = vsyncadd [#allocation4], 4294967168 }
 0x365   :  { %878 = vsyncpa [#allocation3], 1 }
 0x366   :  { %879 = vsyncpa [#allocation6], 1 }
 0x367   :  { %880 = vsyncpa [#allocation4], 1 }

</bundles_post_ra>
